<compile_context>
chip_gen: v5e
topology: v5e:2x2
jax: 0.10.0
libtpu: 0.0.40
codegen_flags: <defaults>
</compile_context>

<pallas_src>
import jax
import jax.numpy as jnp
from jax.experimental import pallas as pl
from jax.experimental.pallas import tpu as pltpu


_VMEM_SPEC = pl.BlockSpec(memory_space=pltpu.MemorySpace.VMEM)


def _round_up(x, m):
    return ((x + m - 1) // m) * m


# ---------------------------------------------------------------------------
# Fused kernel: x -> [Linear(+folded BN) + ReLU] * N -> VPU regressor reduce.
# All parameters live in ONE lane-dense slab; `meta` holds static row offsets.
# ---------------------------------------------------------------------------
def _make_fused_forward_kernel(meta):
    layers = meta["layers"]          # tuple of (w_row_off, in_features, b_row_off)
    reg_off = meta["reg_off"]

    def kernel(x_ref, slab_ref, o_ref):
        h = x_ref[...]
        for li, (w_off, in_f, b_off) in enumerate(layers):   # static unroll
            w = slab_ref[w_off:w_off + in_f, :]               # (in_f, LANES), static slice
            b = slab_ref[b_off:b_off + 1, :]                  # (1, LANES)
            h_in = h if li == 0 else h[:, :in_f]
            h = jnp.dot(h_in, w, preferred_element_type=jnp.float32)
            h = jnp.maximum(h + b, 0.0)                       # bias + ReLU (BN folded)
        # Regressor (out_features = 1) on the VPU + lane reduce.  Its bias sits
        # in the slab row at the spare "ones" lane (see pack_params), so the
        # reduce absorbs it for free.
        wr = slab_ref[reg_off:reg_off + 1, :]
        o_ref[...] = jnp.sum(h * wr, axis=-1, keepdims=True)

    return kernel


def make_clinical_net_forward(meta):
    """Build the jitted fused forward (regress=True path, eval-mode BN)."""
    kernel = _make_fused_forward_kernel(meta)
    flops_per_row = 2 * sum(in_f * meta["lanes"] for (_, in_f, _) in meta["layers"])
    flops_per_row += 2 * meta["lanes"]          # regressor mul + lane reduce

    @jax.jit
    def forward(clinical, slab):
        B = clinical.shape[0]
        bytes_accessed = (clinical.size + slab.size + B) * 4
        return pl.pallas_call(
            kernel,
            out_shape=jax.ShapeDtypeStruct((B, 1), jnp.float32),
            in_specs=[_VMEM_SPEC, _VMEM_SPEC],
            out_specs=_VMEM_SPEC,
            cost_estimate=pl.CostEstimate(
                flops=B * flops_per_row,
                transcendentals=0,
                bytes_accessed=bytes_accessed),
        )(clinical, slab)

    return forward


# ---------------------------------------------------------------------------
# Parameter construction (mirrors ClinicalNet.__init__ shapes)
# ---------------------------------------------------------------------------
def init_raw_params(key, hidden_layer, linear_bias=True):
    """Deterministic per-layer Linear + BatchNorm1d parameters (PyTorch-like
    shapes, except Linear weights are stored (in, out) so kernels do x @ W + b)."""
    params = {"fc": [], "regressor": None}
    for inf, outf in hidden_layer:
        key, kw, kb, kg, kbeta, km, kv = jax.random.split(key, 7)
        w = jax.random.normal(kw, (inf, outf), jnp.float32) * 0.1
        b = (jax.random.normal(kb, (1, outf), jnp.float32) * 0.1
             if linear_bias else jnp.zeros((1, outf), jnp.float32))
        gamma = 1.0 + 0.05 * jax.random.normal(kg, (outf,), jnp.float32)
        beta = 0.05 * jax.random.normal(kbeta, (outf,), jnp.float32)
        running_mean = 0.1 * jax.random.normal(km, (outf,), jnp.float32)
        running_var = jnp.abs(1.0 + 0.1 * jax.random.normal(kv, (outf,), jnp.float32))
        params["fc"].append(dict(w=w, b=b, gamma=gamma, beta=beta,
                                 running_mean=running_mean, running_var=running_var))
    key, kw, kb = jax.random.split(key, 3)
    last_out = hidden_layer[-1][1]
    w_r = jax.random.normal(kw, (last_out, 1), jnp.float32) * 0.1
    b_r = (jax.random.normal(kb, (1, 1), jnp.float32) * 0.1
           if linear_bias else jnp.zeros((1, 1), jnp.float32))
    params["regressor"] = dict(w=w_r, b=b_r)
    return params


# ---------------------------------------------------------------------------
# BN folding + single-slab packing (setup time, exact f32 algebra)
# ---------------------------------------------------------------------------
def pack_params(raw, eps=1e-5):
    """Fold eval-mode BN_i into Linear_{i+1} (last BN into the regressor) and
    pack every parameter into ONE lane-dense (rows, LANES) f32 slab.

      y = ReLU(x@W_i + b_i) * scale_i + shift_i
      y @ W_{i+1} + b_{i+1} = ReLU(...) @ (scale_i[:,None]*W_{i+1})
                              + (b_{i+1} + shift_i @ W_{i+1})

    Slab layout (each section starts on an 8-row boundary for aligned slices):
        [W_1 | b_1 | W_2 | b_2 | ... | W_N | b_N | wr_row]
    The last bias row carries 1.0 in spare lane `last_out` (so ReLU gives a
    constant-1 lane) and wr_row carries the regressor bias in that lane.
    """
    assert len(raw["fc"]) >= 1, "ClinicalNet needs at least one hidden block"

    # ---- 1) fold eval-mode BN into the following Linear / regressor ----
    folded = []
    pend_scale = pend_shift = None
    for lyr in raw["fc"]:
        w, b = lyr["w"], lyr["b"]
        if pend_scale is not None:
            w_new = pend_scale[:, None] * w
            b_new = b + pend_shift @ lyr["w"]
        else:
            w_new, b_new = w, b
        scale = lyr["gamma"] / jnp.sqrt(lyr["running_var"] + eps)
        shift = (lyr["beta"] - lyr["running_mean"] * scale).reshape(1, -1)
        folded.append((w_new, b_new))
        pend_scale, pend_shift = scale, shift

    w_r = pend_scale[:, None] * raw["regressor"]["w"]                    # (last_out, 1)
    b_r = raw["regressor"]["b"] + pend_shift @ raw["regressor"]["w"]     # (1, 1)

    # ---- 2) pack into a single lane-dense slab ----
    last_out = folded[-1][0].shape[1]
    max_out = max(w.shape[1] for w, _ in folded)
    lanes = _round_up(max(max_out + 1, 128), 128)   # +1 guarantees a spare "ones" lane
    ones_lane = last_out                            # zero-padded column in the last layer

    blocks, layers_meta, row = [], [], 0
    for li, (w, b) in enumerate(folded):
        in_f, out_f = w.shape
        w_rows = _round_up(in_f, 8)
        blocks.append(jnp.pad(w, ((0, w_rows - in_f), (0, lanes - out_f))))
        b_row = jnp.pad(b, ((0, 0), (0, lanes - out_f)))
        if li == len(folded) - 1:
            b_row = b_row.at[0, ones_lane].set(1.0)   # ReLU(0 + 1) = 1 -> constant lane
        blocks.append(jnp.pad(b_row, ((0, 7), (0, 0))))
        layers_meta.append((row, in_f, row + w_rows))
        row += w_rows + 8

    wr_row = jnp.zeros((1, lanes), jnp.float32)
    wr_row = wr_row.at[0, :last_out].set(w_r[:, 0])
    wr_row = wr_row.at[0, ones_lane].set(b_r[0, 0])   # bias rides the constant-1 lane
    blocks.append(jnp.pad(wr_row, ((0, 7), (0, 0))))
    reg_off = row
    row += 8

    slab = jnp.concatenate(blocks, axis=0).astype(jnp.float32)
    meta = dict(layers=tuple(layers_meta), reg_off=reg_off, lanes=lanes)
    return slab, meta


# ---------------------------------------------------------------------------
# Pure-JAX reference (un-folded: Linear -> ReLU -> eval-mode BN -> regressor)
# ---------------------------------------------------------------------------
def reference_forward(clinical, raw, eps=1e-5):
    x = clinical
    for lyr in raw["fc"]:
        x = jnp.maximum(x @ lyr["w"] + lyr["b"], 0.0)
        scale = lyr["gamma"] / jnp.sqrt(lyr["running_var"] + eps)
        shift = lyr["beta"] - lyr["running_mean"] * scale
        x = x * scale + shift
    x = x @ raw["regressor"]["w"] + raw["regressor"]["b"]
    return x


if __name__ == "__main__":
    # hidden_layer is a list of (in_features, out_features) pairs per the module.
    hidden_layer = [(16, 32), (32, 32)]
    batch = 8

    key = jax.random.PRNGKey(0)
    key, k_in = jax.random.split(key)
    clinical = jax.random.normal(k_in, (batch, hidden_layer[0][0]), jnp.float32)

    raw_params = init_raw_params(key, hidden_layer, linear_bias=True)
    slab, meta = pack_params(raw_params)
    forward = make_clinical_net_forward(meta)

    out = jax.block_until_ready(forward(clinical, slab))

    ref = reference_forward(clinical, raw_params)
    assert out.shape == (batch, 1), out.shape
    assert jnp.allclose(out, ref, atol=1e-4, rtol=1e-4), "mismatch vs reference"

    print("KERNEL_OK")
</pallas_src>

<mosaic_0001>
module attributes {stable_mosaic.version = 11 : i64} {
  func.func @kernel(%arg0: memref<8x16xf32, #tpu.memory_space<vmem>>, %arg1: memref<72x128xf32, #tpu.memory_space<vmem>>, %arg2: memref<8x1xf32, #tpu.memory_space<vmem>>) attributes {dimension_semantics = [], scalar_prefetch = 0 : i64, scratch_operands = 0 : i64, tpu.core_type = #tpu.core_type<tc>} {
    %c0 = arith.constant 0 : index
    %c0_0 = arith.constant 0 : index
    %0 = vector.load %arg0[%c0, %c0_0] : memref<8x16xf32, #tpu.memory_space<vmem>>, vector<8x16xf32>
    %c0_1 = arith.constant 0 : index
    %c0_2 = arith.constant 0 : index
    %1 = vector.load %arg1[%c0_1, %c0_2] : memref<72x128xf32, #tpu.memory_space<vmem>>, vector<16x128xf32>
    %c16 = arith.constant 16 : index
    %c0_3 = arith.constant 0 : index
    %2 = vector.load %arg1[%c16, %c0_3] : memref<72x128xf32, #tpu.memory_space<vmem>>, vector<1x128xf32>
    %cst = arith.constant dense<0.000000e+00> : vector<8x128xf32>
    %3 = tpu.matmul %0, %1, %cst {dimension_numbers = #tpu.dot_dimension_numbers<[1], [0], [0], [1], [0, 0, 1, 1], [], []>} : vector<8x16xf32>, vector<16x128xf32>, vector<8x128xf32> -> vector<8x128xf32>
    %4 = vector.broadcast %2 : vector<1x128xf32> to vector<8x128xf32>
    %5 = arith.addf %3, %4 : vector<8x128xf32>
    %cst_4 = arith.constant 0.000000e+00 : f32
    %6 = vector.broadcast %cst_4 : f32 to vector<8x128xf32>
    %7 = arith.maximumf %5, %6 : vector<8x128xf32>
    %c24 = arith.constant 24 : index
    %c0_5 = arith.constant 0 : index
    %8 = vector.load %arg1[%c24, %c0_5] : memref<72x128xf32, #tpu.memory_space<vmem>>, vector<32x128xf32>
    %c56 = arith.constant 56 : index
    %c0_6 = arith.constant 0 : index
    %9 = vector.load %arg1[%c56, %c0_6] : memref<72x128xf32, #tpu.memory_space<vmem>>, vector<1x128xf32>
    %10 = vector.extract_strided_slice %7 {offsets = [0, 0], sizes = [8, 32], strides = [1, 1]} : vector<8x128xf32> to vector<8x32xf32>
    %cst_7 = arith.constant dense<0.000000e+00> : vector<8x128xf32>
    %11 = tpu.matmul %10, %8, %cst_7 {dimension_numbers = #tpu.dot_dimension_numbers<[1], [0], [0], [1], [0, 0, 1, 1], [], []>} : vector<8x32xf32>, vector<32x128xf32>, vector<8x128xf32> -> vector<8x128xf32>
    %12 = vector.broadcast %9 : vector<1x128xf32> to vector<8x128xf32>
    %13 = arith.addf %11, %12 : vector<8x128xf32>
    %cst_8 = arith.constant 0.000000e+00 : f32
    %14 = vector.broadcast %cst_8 : f32 to vector<8x128xf32>
    %15 = arith.maximumf %13, %14 : vector<8x128xf32>
    %c64 = arith.constant 64 : index
    %c0_9 = arith.constant 0 : index
    %16 = vector.load %arg1[%c64, %c0_9] : memref<72x128xf32, #tpu.memory_space<vmem>>, vector<1x128xf32>
    %17 = vector.broadcast %16 : vector<1x128xf32> to vector<8x128xf32>
    %18 = arith.mulf %15, %17 : vector<8x128xf32>
    %cst_10 = arith.constant dense<0.000000e+00> : vector<8xf32>
    %19 = vector.multi_reduction <add>, %18, %cst_10 [1] : vector<8x128xf32> to vector<8xf32>
    %20 = vector.shape_cast %19 : vector<8xf32> to vector<8x1xf32>
    %c0_11 = arith.constant 0 : index
    %c0_12 = arith.constant 0 : index
    %21 = vector.load %arg2[%c0_11, %c0_12] : memref<8x1xf32, #tpu.memory_space<vmem>>, vector<8x1xf32>
    tpu.vector_store %arg2[%c0_11, %c0_12], %20 {strides = array<i32>} : memref<8x1xf32, #tpu.memory_space<vmem>>, vector<8x1xf32>,
    return
  }
}

</mosaic_0001>

<bundles_post_ra>
// kernel: forward.1
= control target key start
LH: loop header
LB: loop body
LE: loop exit
PB: predicated region body
PF: predicated region fallthrough
CT: control target
= control target key end

     0   :  { %7 = vsyncpa [#allocation3], 0  ;;  %s204_s0 = inlined_call_operand.hbm [shape: f32[8,16], index: 0, kind: input, shape index: {}]   ;;  %s205_s1 = inlined_call_operand.hbm [shape: f32[72,128], index: 1, kind: input, shape index: {}]   ;;  %s206_s2 = inlined_call_operand.vmem [shape: f32[8,1], index: 2, kind: output, shape index: {}]  }
   0x1   :  { %s14_s11 = sshll.u32 %s204_s0, 4  ;;  %s15_s11 = int_to_ptr.hbm [resolvable:$true] %s14_s11 }
   0x2   :  { %8 = vsyncpa [#allocation5], 0  ;;  %s176_s12 = smov [#allocation2]   ;;  %s24_s16 = sshll.u32 %s205_s1, 4  ;;  %s25_s16 = int_to_ptr.hbm [resolvable:$true] %s24_s16 }
   0x3   :  { %s16_s13 = sshll.u32 %s176_s12, 4  ;;  %s177_s17 = smov [#allocation4]   ;;  %s17_s13 = int_to_ptr.vmem [resolvable:$true] %s16_s13 }
   0x4   :  { %19 = dma.hbm_to_vmem [thread:$0]  %s15_s11, 128, %s17_s13, [#allocation3]  }
   0x5   :  { %s26_s18 = sshll.u32 %s177_s17, 4  ;;  %s178_s19 = smov 128   ;;  %s27_s18 = int_to_ptr.vmem [resolvable:$true] %s26_s18 }
   0x6   :  { %s179_s20 = smov 8  }
   0x7   :  { %32 = dma.hbm_to_vmem [thread:$0]  %s25_s16, 1152, %s27_s18, [#allocation5], %s178_s19, %s178_s19, %s179_s20  }
   0x8   :  { %172 = dma.done.wait [#allocation3], 128  }
   0x9   :  { %173 = vsyncadd [#allocation3], 4294967168 }
   0xa   :  { %174 = dma.done.wait [#allocation5], 1152  }
   0xb   :  { %175 = vsyncadd [#allocation5], 4294966144  ;;  %v43_v0 = vld [vmem:[#allocation4 + $0x8] sm:$0xff]  ;;  %v42_v1 = vld [vmem:[#allocation4] sm:$0xff]  ;;  %vm46_vm0 = vcmask 130048   ;;  %vm77_vm1 = vcmask 261120  }
   0xc   :  { %64 = vmatpush.msra.mxu0 %v43_v0  ;;  %v41_v2 = vld [vmem:[#allocation2] sm:$0xff]  ;;  %v74_v3 = vld [vmem:[#allocation4 + $0x30] sm:$0xff]  ;;  %v73_v4 = vld [vmem:[#allocation4 + $0x28] sm:$0xff]  ;;  %vm107_vm2 = vcmask 7168  }
   0xd   :  { %93 = vmatpush.msra.mxu1 %v74_v3  ;;  %v72_v5 = vld [vmem:[#allocation4 + $0x20] sm:$0xff]  ;;  %v71_v6 = vld [vmem:[#allocation4 + $0x18] sm:$0xff]  ;;  %v121_v7 = vld [vmem:[#allocation4 + $0x10] ss:$0 sm:$0xff] }
   0xe   :  { %65 = vmatpush.msra.mxu0 %v42_v1  ;;  %v122_v11 = vld [vmem:[#allocation4 + $0x38] ss:$0 sm:$0xff]  ;;  %v123_v14 = vld [vmem:[#allocation4 + $0x40] ss:$0 sm:$0xff] }
   0xf   :  { %115 = vmatmul.msk.f32.vlgmr.msra.gmra.mxu0 %vm46_vm0, %v41_v2  ;;  %94 = vmatpush.msra.mxu1 %v73_v4 }
  0x11   :  { %95 = vmatpush.msra.mxu1 %v72_v5 }
  0x13   :  { %96 = vmatpush.msra.mxu1 %v71_v6 }
  0x8c   :  { %v67_v8 = vpop.f32.mrf.mxu0 }
  0x8d   :  { %v68_v9 = vadd.f32 %v121_v7, %v67_v8 }
  0x8f   :  { %v70_v10 = vmax.f32 %v68_v9, 0.0 }
  0x91   :  { %116 = vmatmul.msk.f32.vlgmr.msra.gmra.mxu1 %vm77_vm1, %v70_v10 }
 0x10e   :  { %v98_v12 = vpop.f32.mrf.mxu1 }
 0x10f   :  { %v99_v13 = vadd.f32 %v122_v11, %v98_v12 }
 0x111   :  { %v101_v15 = vmax.f32 %v99_v13, 0.0 }
 0x113   :  { %v104_v16 = vmul.f32 %v123_v14, %v101_v15 }
 0x115   :  { %105 = vadd.xlane.f32.xlu0 %v104_v16 }
 0x188   :  { %v106_v17 = vpop.xlane.xlu0 %105 }
 0x189   :  { %108 = vst.msk [vmem:[%s206_s2] sm:$0xff] %vm107_vm2, %v106_v17 }
 0x18a   :  { %113 = vsyncpa [#allocation3], 1 }
 0x18b   :  { %114 = vsyncpa [#allocation5], 1 }

</bundles_post_ra>
